<compile_context>
chip_gen: v7x
topology: tpu7x:2x2x1
jax: 0.10.0
libtpu: 0.0.40
codegen_flags: <defaults>
</compile_context>

<pallas_src>
import jax
import jax.numpy as jnp
from jax.experimental import pallas as pl
from jax.experimental.pallas import tpu as pltpu


def _round_up(x, m):
    return ((x + m - 1) // m) * m


# ----------------------------------------------------------------------------
# Head / fused-dimension layout helpers (static, derived from types_list)
# ----------------------------------------------------------------------------
def _head_layout(types_list):
    """Column layout of the fused output slab: (name, type, offset, width)."""
    layout, off = [], 0
    for td in types_list:
        t = td['type']
        if t in ('real', 'pos', 'bin'):
            w = 1
        elif t == 'cat':
            w = int(td['nclass'])          # includes the prepended zeros column
        else:
            w = 0
        layout.append((td['name'], t, off, w))
        off += w
    return layout, off


def _fused_dims(types_list, h_dim, s_dim):
    V = len(types_list)
    layout, total = _head_layout(types_list)
    d1 = _round_up(2 * h_dim * V, 128)          # fused layer-1 width
    d2 = _round_up(h_dim * V, 128)              # fused layer-2/3/head-hidden width
    d_out = _round_up(max(total, 1), 128)       # lane-dense output width
    dims = dict(
        d1=d1, d2=d2, d_out=d_out, wb_cols=max(d2, d_out),
        # slab A: W1 row-blocks [phi | h_past | s] + b1 row
        a_rows=_round_up(2 * h_dim + s_dim + 1, 16),
        r_b1=2 * h_dim + s_dim,
        # slab B: W2, W3, Wp, Wf stacked + 4 bias rows (b2, b3, bp, bf)
        o_w2=0, o_w3=d1, o_wp=d1 + d2, o_wf=d1 + 2 * d2, o_bias=d1 + 3 * d2,
        b_rows=_round_up(d1 + 3 * d2 + 4, 16),
    )
    return dims, layout


# ----------------------------------------------------------------------------
# Parameter construction (deterministic, synthetic) — PyTorch-equivalent layout
# ----------------------------------------------------------------------------
def _linear_params(key, fan_in, fan_out):
    kw, kb = jax.random.split(key)
    scale = 1.0 / jnp.sqrt(jnp.asarray(fan_in, jnp.float32))
    w = jax.random.uniform(kw, (fan_in, fan_out), jnp.float32, -scale, scale)
    b = jax.random.uniform(kb, (1, fan_out), jnp.float32, -scale, scale)
    return w, b


def init_heter_decoder_params(key, h_dim, s_dim, types_list):
    params = {}
    for i, td in enumerate(types_list):
        k = jax.random.fold_in(key, i)
        ks = jax.random.split(k, 6)
        in_dim = h_dim + h_dim + s_dim
        p = {}
        p['W1'], p['b1'] = _linear_params(ks[0], in_dim, 2 * h_dim)
        p['W2'], p['b2'] = _linear_params(ks[1], 2 * h_dim, h_dim)
        p['W3'], p['b3'] = _linear_params(ks[2], h_dim, h_dim)
        t = td['type']
        if t in ('real', 'pos'):
            p['Wm'], p['bm'] = _linear_params(ks[3], h_dim, 1)
        elif t == 'bin':
            p['Wp1'], p['bp1'] = _linear_params(ks[3], h_dim, h_dim)
            p['Wp2'], p['bp2'] = _linear_params(ks[4], h_dim, 1)
        elif t == 'cat':
            C = int(td['nclass'])
            p['Wp1'], p['bp1'] = _linear_params(ks[3], h_dim, h_dim)
            p['Wp2'], p['bp2'] = _linear_params(ks[4], h_dim, C - 1)
        params[td['name']] = p
    return params


# ----------------------------------------------------------------------------
# Packing: per-variable params -> 2 bf16 weight+bias slabs (done once)
# ----------------------------------------------------------------------------
def pack_fused_params(params, types_list, h_dim, s_dim):
    dims, layout = _fused_dims(types_list, h_dim, s_dim)
    d1, d2, d_out = dims['d1'], dims['d2'], dims['d_out']
    r_b1, o_w2, o_w3 = dims['r_b1'], dims['o_w2'], dims['o_w3']
    o_wp, o_wf, o_bias = dims['o_wp'], dims['o_wf'], dims['o_bias']

    WA = jnp.zeros((dims['a_rows'], d1), jnp.float32)
    WB = jnp.zeros((dims['b_rows'], dims['wb_cols']), jnp.float32)
    eye_h = jnp.eye(h_dim, dtype=jnp.float32)

    for v, (td, (name, t, off, _w)) in enumerate(zip(types_list, layout)):
        p = params[name]
        c1 = slice(v * 2 * h_dim, (v + 1) * 2 * h_dim)   # layer-1 cols of var v
        c2 = slice(v * h_dim, (v + 1) * h_dim)           # layer-2/3 cols of var v
        # layer 1: W1 rows split by input block (PyTorch embed = [phi_z|s|h_past])
        WA = WA.at[0:h_dim, c1].set(p['W1'][0:h_dim])                             # phi_z
        WA = WA.at[h_dim:2 * h_dim, c1].set(p['W1'][h_dim + s_dim:])              # h_past
        WA = WA.at[2 * h_dim:2 * h_dim + s_dim, c1].set(p['W1'][h_dim:h_dim + s_dim])  # s
        WA = WA.at[r_b1:r_b1 + 1, c1].set(p['b1'])
        # trunk layers 2 & 3 (block-diagonal across variables)
        WB = WB.at[o_w2 + 2 * h_dim * v:o_w2 + 2 * h_dim * (v + 1), c2].set(p['W2'])
        WB = WB.at[o_bias + 0:o_bias + 1, c2].set(p['b2'])
        WB = WB.at[o_w3 + h_dim * v:o_w3 + h_dim * (v + 1), c2].set(p['W3'])
        WB = WB.at[o_bias + 1:o_bias + 2, c2].set(p['b3'])
        # head hidden + fused final head
        rp = slice(o_wp + h_dim * v, o_wp + h_dim * (v + 1))
        rf = slice(o_wf + h_dim * v, o_wf + h_dim * (v + 1))
        if t in ('real', 'pos'):
            # identity pass-through; valid because trunk output h3 >= 0 (ReLU)
            WB = WB.at[rp, c2].set(eye_h)
            WB = WB.at[rf, off:off + 1].set(p['Wm'])
            WB = WB.at[o_bias + 3:o_bias + 4, off:off + 1].set(p['bm'])
        elif t == 'bin':
            WB = WB.at[rp, c2].set(p['Wp1'])
            WB = WB.at[o_bias + 2:o_bias + 3, c2].set(p['bp1'])
            WB = WB.at[rf, off:off + 1].set(p['Wp2'])
            WB = WB.at[o_bias + 3:o_bias + 4, off:off + 1].set(p['bp2'])
        elif t == 'cat':
            C = int(td['nclass'])
            WB = WB.at[rp, c2].set(p['Wp1'])
            WB = WB.at[o_bias + 2:o_bias + 3, c2].set(p['bp1'])
            # column `off` stays all-zero weight & bias -> prepended zeros column
            WB = WB.at[rf, off + 1:off + C].set(p['Wp2'])
            WB = WB.at[o_bias + 3:o_bias + 4, off + 1:off + C].set(p['bp2'])

    return dict(wa=WA.astype(jnp.bfloat16), wb=WB.astype(jnp.bfloat16))


# ----------------------------------------------------------------------------
# Forward pass (single fused pallas_call, batch-tiled grid, resident weights)
# ----------------------------------------------------------------------------
def make_heter_decoder_forward(types_list, h_dim, s_dim, fixed_std=0.1,
                               max_tile_rows=512):
    dims, layout = _fused_dims(types_list, h_dim, s_dim)
    d1, d2, d_out = dims['d1'], dims['d2'], dims['d_out']
    r_b1, o_w2, o_w3 = dims['r_b1'], dims['o_w2'], dims['o_w3']
    o_wp, o_wf, o_bias = dims['o_wp'], dims['o_wf'], dims['o_bias']
    a_rows, b_rows, wb_cols = dims['a_rows'], dims['b_rows'], dims['wb_cols']
    f32 = jnp.float32
    bf16 = jnp.bfloat16

    def kernel(phi_ref, s_ref, h_ref, wa_ref, wb_ref, out_ref):
        # Layer 1: embed @ W1 + b1 done as three row-block matmuls (no concat).
        h1 = (jnp.dot(phi_ref[...], wa_ref[0:h_dim, :], preferred_element_type=f32)
              + jnp.dot(h_ref[...], wa_ref[h_dim:2 * h_dim, :], preferred_element_type=f32)
              + jnp.dot(s_ref[...], wa_ref[2 * h_dim:r_b1, :], preferred_element_type=f32)
              + wa_ref[r_b1:r_b1 + 1, :].astype(f32))
        h1 = jnp.maximum(h1, 0.0).astype(bf16)
        # Layer 2.
        h2 = (jnp.dot(h1, wb_ref[o_w2:o_w2 + d1, 0:d2], preferred_element_type=f32)
              + wb_ref[o_bias:o_bias + 1, 0:d2].astype(f32))
        h2 = jnp.maximum(h2, 0.0).astype(bf16)
        # Layer 3.
        h3 = (jnp.dot(h2, wb_ref[o_w3:o_w3 + d2, 0:d2], preferred_element_type=f32)
              + wb_ref[o_bias + 1:o_bias + 2, 0:d2].astype(f32))
        h3 = jnp.maximum(h3, 0.0).astype(bf16)
        # Head hidden layer (Linear+ReLU for bin/cat; identity blocks for real/pos).
        hp = (jnp.dot(h3, wb_ref[o_wp:o_wp + d2, 0:d2], preferred_element_type=f32)
              + wb_ref[o_bias + 2:o_bias + 3, 0:d2].astype(f32))
        hp = jnp.maximum(hp, 0.0).astype(bf16)
        # All final heads fused (incl. the cat zero column) -> one lane-dense store.
        out_ref[...] = (jnp.dot(hp, wb_ref[o_wf:o_wf + d2, 0:d_out],
                                preferred_element_type=f32)
                        + wb_ref[o_bias + 3:o_bias + 4, 0:d_out].astype(f32))

    def forward(fused, phi_z_t, s_t, h_past):
        B = phi_z_t.shape[0]
        b_pad = max(_round_up(B, 16), 16)          # bf16 sublane packing
        if b_pad <= max_tile_rows:
            tile_b = b_pad
        else:
            tile_b = max_tile_rows
            b_pad = _round_up(b_pad, tile_b)
        n_tiles = b_pad // tile_b

        def prep(x):                                # bf16 cast + zero-pad batch rows
            x = x.astype(bf16)
            if b_pad != B:
                x = jnp.pad(x, ((0, b_pad - B), (0, 0)))
            return x

        phi, s, h = prep(phi_z_t), prep(s_t), prep(h_past)

        flops = 2 * b_pad * (2 * h_dim * d1 + s_dim * d1 + d1 * d2
                             + 2 * d2 * d2 + d2 * d_out)
        bytes_accessed = (2 * (a_rows * d1 + b_rows * wb_cols)     # bf16 weight slabs
                          + 2 * b_pad * (2 * h_dim + s_dim)        # bf16 activations
                          + 4 * b_pad * d_out)                     # f32 output

        slab = pl.pallas_call(
            kernel,
            grid=(n_tiles,),
            in_specs=[
                pl.BlockSpec((tile_b, h_dim), lambda i: (i, 0)),
                pl.BlockSpec((tile_b, s_dim), lambda i: (i, 0)),
                pl.BlockSpec((tile_b, h_dim), lambda i: (i, 0)),
                # constant block index -> weights DMA'd once, VMEM-resident
                pl.BlockSpec((a_rows, d1), lambda i: (0, 0)),
                pl.BlockSpec((b_rows, wb_cols), lambda i: (0, 0)),
            ],
            out_specs=pl.BlockSpec((tile_b, d_out), lambda i: (i, 0)),
            out_shape=jax.ShapeDtypeStruct((b_pad, d_out), f32),
            compiler_params=pltpu.CompilerParams(
                dimension_semantics=("parallel",)),     # shard batch tiles on v7x
            cost_estimate=pl.CostEstimate(flops=flops, transcendentals=0,
                                          bytes_accessed=bytes_accessed),
        )(phi, s, h, fused['wa'], fused['wb'])

        out = {}
        for name, t, off, w in layout:
            if t in ('real', 'pos'):
                mean = slab[:B, off:off + 1]
                std = jnp.full((B, 1), fixed_std, f32)
                out[name] = [mean, std]
            elif t == 'bin':
                out[name] = slab[:B, off:off + 1]
            elif t == 'cat':
                out[name] = slab[:B, off:off + w]   # zero column already included
        return out

    return forward


# ----------------------------------------------------------------------------
# Pure-JAX reference (unfused, per-variable) for verification.
# op_dtype=bf16 mirrors the kernel numerics (bf16 operands, f32 accumulation);
# op_dtype=f32 is the plain module semantics (checked with loose tolerance).
# ----------------------------------------------------------------------------
def _reference_forward(params, phi_z_t, s_t, h_past, types_list,
                       fixed_std=0.1, op_dtype=jnp.float32):
    def lin(x, w, b):
        y = jnp.dot(x.astype(op_dtype), w.astype(op_dtype),
                    preferred_element_type=jnp.float32)
        return y + b.astype(op_dtype).astype(jnp.float32)

    relu = lambda t: jnp.maximum(t, 0.0)
    B = phi_z_t.shape[0]
    embed = jnp.concatenate([phi_z_t, s_t, h_past], axis=1)
    out = {}
    for td in types_list:
        name, t = td['name'], td['type']
        p = params[name]
        dec = relu(lin(embed, p['W1'], p['b1']))
        dec = relu(lin(dec, p['W2'], p['b2']))
        dec = relu(lin(dec, p['W3'], p['b3']))
        if t in ('real', 'pos'):
            mean = lin(dec, p['Wm'], p['bm'])
            std = jnp.full((B, 1), fixed_std, jnp.float32)
            out[name] = [mean, std]
        elif t == 'bin':
            hp = relu(lin(dec, p['Wp1'], p['bp1']))
            out[name] = lin(hp, p['Wp2'], p['bp2'])
        elif t == 'cat':
            hp = relu(lin(dec, p['Wp1'], p['bp1']))
            logits = lin(hp, p['Wp2'], p['bp2'])
            out[name] = jnp.concatenate(
                [jnp.zeros((B, 1), jnp.float32), logits], axis=1)
    return out


# ----------------------------------------------------------------------------
# Main
# ----------------------------------------------------------------------------
if __name__ == "__main__":
    h_dim, s_dim, batch = 32, 8, 2
    fixed_std = 0.1
    types_list = [
        {'name': 'v_real', 'type': 'real', 'dim': 1},
        {'name': 'v_pos',  'type': 'pos',  'dim': 1},
        {'name': 'v_bin',  'type': 'bin',  'dim': 1},
        {'name': 'v_cat',  'type': 'cat',  'dim': 1, 'nclass': 5},
    ]

    key = jax.random.PRNGKey(0)
    kparam, kphi, ks, kh = jax.random.split(key, 4)
    params = init_heter_decoder_params(kparam, h_dim, s_dim, types_list)
    fused = pack_fused_params(params, types_list, h_dim, s_dim)   # packed once

    phi_z_t = jax.random.normal(kphi, (batch, h_dim), jnp.float32)
    s_t = jax.random.normal(ks, (batch, s_dim), jnp.float32)
    h_past = jax.random.normal(kh, (batch, h_dim), jnp.float32)

    fwd = jax.jit(make_heter_decoder_forward(types_list, h_dim, s_dim, fixed_std))
    out = jax.block_until_ready(fwd(fused, phi_z_t, s_t, h_past))

    # Tight check vs. numerics-matched (bf16-operand) reference.
    ref_bf = _reference_forward(params, phi_z_t, s_t, h_past, types_list,
                                fixed_std, op_dtype=jnp.bfloat16)
    # Loose check vs. plain f32 module semantics (covers bf16 weight storage).
    ref_f32 = _reference_forward(params, phi_z_t, s_t, h_past, types_list,
                                 fixed_std, op_dtype=jnp.float32)

    flat_out, tree_out = jax.tree_util.tree_flatten(out)
    flat_bf, tree_bf = jax.tree_util.tree_flatten(ref_bf)
    flat_f32, _ = jax.tree_util.tree_flatten(ref_f32)
    assert tree_out == tree_bf
    for a, b, c in zip(flat_out, flat_bf, flat_f32):
        assert a.shape == b.shape, (a.shape, b.shape)
        assert jnp.allclose(a, b, atol=1e-4, rtol=1e-4)
        assert jnp.allclose(a, c, atol=8e-2, rtol=5e-2)

    # TODO(synk): learn_std=True branch (Softplus std head) not implemented; the
    # original module defaults to learn_std=False, which is what is mirrored here.
    print("KERNEL_OK")
</pallas_src>

<mosaic_0001>
module attributes {stable_mosaic.version = 11 : i64} {
  func.func @kernel(%arg0: i32, %arg1: memref<16x32xbf16, #tpu.memory_space<vmem>>, %arg2: memref<16x8xbf16, #tpu.memory_space<vmem>>, %arg3: memref<16x32xbf16, #tpu.memory_space<vmem>>, %arg4: memref<80x256xbf16, #tpu.memory_space<vmem>>, %arg5: memref<656x128xbf16, #tpu.memory_space<vmem>>, %arg6: memref<16x128xf32, #tpu.memory_space<vmem>>) attributes {dimension_semantics = [#tpu.dimension_semantics<parallel>], iteration_bounds = array<i64: 1>, scalar_prefetch = 0 : i64, scratch_operands = 0 : i64, tpu.core_type = #tpu.core_type<tc>, window_params = [{transform_indices = @transform_0, window_bounds = array<i64: 16, 32>}, {transform_indices = @transform_1, window_bounds = array<i64: 16, 8>}, {transform_indices = @transform_2, window_bounds = array<i64: 16, 32>}, {pipeline_mode = #tpu.pipeline_mode<synchronous>, transform_indices = @transform_3, window_bounds = array<i64: 80, 256>}, {pipeline_mode = #tpu.pipeline_mode<synchronous>, transform_indices = @transform_4, window_bounds = array<i64: 656, 128>}, {transform_indices = @transform_5, window_bounds = array<i64: 16, 128>}]} {
    %c0 = arith.constant 0 : index
    %c0_0 = arith.constant 0 : index
    %0 = vector.load %arg1[%c0, %c0_0] : memref<16x32xbf16, #tpu.memory_space<vmem>>, vector<16x32xbf16>
    %c0_1 = arith.constant 0 : index
    %c0_2 = arith.constant 0 : index
    %1 = vector.load %arg4[%c0_1, %c0_2] : memref<80x256xbf16, #tpu.memory_space<vmem>>, vector<32x256xbf16>
    %cst = arith.constant dense<0.000000e+00> : vector<16x256xf32>
    %2 = tpu.matmul %0, %1, %cst {dimension_numbers = #tpu.dot_dimension_numbers<[1], [0], [0], [1], [0, 0, 1, 1], [], []>} : vector<16x32xbf16>, vector<32x256xbf16>, vector<16x256xf32> -> vector<16x256xf32>
    %c0_3 = arith.constant 0 : index
    %c0_4 = arith.constant 0 : index
    %3 = vector.load %arg3[%c0_3, %c0_4] : memref<16x32xbf16, #tpu.memory_space<vmem>>, vector<16x32xbf16>
    %c32 = arith.constant 32 : index
    %c0_5 = arith.constant 0 : index
    %4 = vector.load %arg4[%c32, %c0_5] : memref<80x256xbf16, #tpu.memory_space<vmem>>, vector<32x256xbf16>
    %cst_6 = arith.constant dense<0.000000e+00> : vector<16x256xf32>
    %5 = tpu.matmul %3, %4, %cst_6 {dimension_numbers = #tpu.dot_dimension_numbers<[1], [0], [0], [1], [0, 0, 1, 1], [], []>} : vector<16x32xbf16>, vector<32x256xbf16>, vector<16x256xf32> -> vector<16x256xf32>
    %6 = arith.addf %2, %5 : vector<16x256xf32>
    %c0_7 = arith.constant 0 : index
    %c0_8 = arith.constant 0 : index
    %7 = vector.load %arg2[%c0_7, %c0_8] : memref<16x8xbf16, #tpu.memory_space<vmem>>, vector<16x8xbf16>
    %c64 = arith.constant 64 : index
    %c0_9 = arith.constant 0 : index
    %8 = vector.load %arg4[%c64, %c0_9] : memref<80x256xbf16, #tpu.memory_space<vmem>>, vector<8x256xbf16>
    %cst_10 = arith.constant dense<0.000000e+00> : vector<16x256xf32>
    %9 = tpu.matmul %7, %8, %cst_10 {dimension_numbers = #tpu.dot_dimension_numbers<[1], [0], [0], [1], [0, 0, 1, 1], [], []>} : vector<16x8xbf16>, vector<8x256xbf16>, vector<16x256xf32> -> vector<16x256xf32>
    %10 = arith.addf %6, %9 : vector<16x256xf32>
    %c72 = arith.constant 72 : index
    %c0_11 = arith.constant 0 : index
    %11 = vector.load %arg4[%c72, %c0_11] : memref<80x256xbf16, #tpu.memory_space<vmem>>, vector<1x256xbf16>
    %12 = arith.extf %11 : vector<1x256xbf16> to vector<1x256xf32>
    %13 = vector.broadcast %12 : vector<1x256xf32> to vector<16x256xf32>
    %14 = arith.addf %10, %13 : vector<16x256xf32>
    %cst_12 = arith.constant 0.000000e+00 : f32
    %15 = vector.broadcast %cst_12 : f32 to vector<16x256xf32>
    %16 = arith.maximumf %14, %15 : vector<16x256xf32>
    %17 = arith.truncf %16 : vector<16x256xf32> to vector<16x256xbf16>
    %c0_13 = arith.constant 0 : index
    %c0_14 = arith.constant 0 : index
    %18 = vector.load %arg5[%c0_13, %c0_14] : memref<656x128xbf16, #tpu.memory_space<vmem>>, vector<256x128xbf16>
    %cst_15 = arith.constant dense<0.000000e+00> : vector<16x128xf32>
    %19 = tpu.matmul %17, %18, %cst_15 {dimension_numbers = #tpu.dot_dimension_numbers<[1], [0], [0], [1], [0, 0, 1, 1], [], []>} : vector<16x256xbf16>, vector<256x128xbf16>, vector<16x128xf32> -> vector<16x128xf32>
    %c640 = arith.constant 640 : index
    %c0_16 = arith.constant 0 : index
    %20 = vector.load %arg5[%c640, %c0_16] : memref<656x128xbf16, #tpu.memory_space<vmem>>, vector<1x128xbf16>
    %21 = arith.extf %20 : vector<1x128xbf16> to vector<1x128xf32>
    %22 = vector.broadcast %21 : vector<1x128xf32> to vector<16x128xf32>
    %23 = arith.addf %19, %22 : vector<16x128xf32>
    %cst_17 = arith.constant 0.000000e+00 : f32
    %24 = vector.broadcast %cst_17 : f32 to vector<16x128xf32>
    %25 = arith.maximumf %23, %24 : vector<16x128xf32>
    %26 = arith.truncf %25 : vector<16x128xf32> to vector<16x128xbf16>
    %c256 = arith.constant 256 : index
    %c0_18 = arith.constant 0 : index
    %27 = vector.load %arg5[%c256, %c0_18] : memref<656x128xbf16, #tpu.memory_space<vmem>>, vector<128x128xbf16>
    %cst_19 = arith.constant dense<0.000000e+00> : vector<16x128xf32>
    %28 = tpu.matmul %26, %27, %cst_19 {dimension_numbers = #tpu.dot_dimension_numbers<[1], [0], [0], [1], [0, 0, 1, 1], [], []>} : vector<16x128xbf16>, vector<128x128xbf16>, vector<16x128xf32> -> vector<16x128xf32>
    %c641 = arith.constant 641 : index
    %c0_20 = arith.constant 0 : index
    %29 = vector.load %arg5[%c641, %c0_20] : memref<656x128xbf16, #tpu.memory_space<vmem>>, vector<1x128xbf16>
    %30 = arith.extf %29 : vector<1x128xbf16> to vector<1x128xf32>
    %31 = vector.broadcast %30 : vector<1x128xf32> to vector<16x128xf32>
    %32 = arith.addf %28, %31 : vector<16x128xf32>
    %cst_21 = arith.constant 0.000000e+00 : f32
    %33 = vector.broadcast %cst_21 : f32 to vector<16x128xf32>
    %34 = arith.maximumf %32, %33 : vector<16x128xf32>
    %35 = arith.truncf %34 : vector<16x128xf32> to vector<16x128xbf16>
    %c384 = arith.constant 384 : index
    %c0_22 = arith.constant 0 : index
    %36 = vector.load %arg5[%c384, %c0_22] : memref<656x128xbf16, #tpu.memory_space<vmem>>, vector<128x128xbf16>
    %cst_23 = arith.constant dense<0.000000e+00> : vector<16x128xf32>
    %37 = tpu.matmul %35, %36, %cst_23 {dimension_numbers = #tpu.dot_dimension_numbers<[1], [0], [0], [1], [0, 0, 1, 1], [], []>} : vector<16x128xbf16>, vector<128x128xbf16>, vector<16x128xf32> -> vector<16x128xf32>
    %c642 = arith.constant 642 : index
    %c0_24 = arith.constant 0 : index
    %38 = vector.load %arg5[%c642, %c0_24] : memref<656x128xbf16, #tpu.memory_space<vmem>>, vector<1x128xbf16>
    %39 = arith.extf %38 : vector<1x128xbf16> to vector<1x128xf32>
    %40 = vector.broadcast %39 : vector<1x128xf32> to vector<16x128xf32>
    %41 = arith.addf %37, %40 : vector<16x128xf32>
    %cst_25 = arith.constant 0.000000e+00 : f32
    %42 = vector.broadcast %cst_25 : f32 to vector<16x128xf32>
    %43 = arith.maximumf %41, %42 : vector<16x128xf32>
    %44 = arith.truncf %43 : vector<16x128xf32> to vector<16x128xbf16>
    %c512 = arith.constant 512 : index
    %c0_26 = arith.constant 0 : index
    %45 = vector.load %arg5[%c512, %c0_26] : memref<656x128xbf16, #tpu.memory_space<vmem>>, vector<128x128xbf16>
    %cst_27 = arith.constant dense<0.000000e+00> : vector<16x128xf32>
    %46 = tpu.matmul %44, %45, %cst_27 {dimension_numbers = #tpu.dot_dimension_numbers<[1], [0], [0], [1], [0, 0, 1, 1], [], []>} : vector<16x128xbf16>, vector<128x128xbf16>, vector<16x128xf32> -> vector<16x128xf32>
    %c643 = arith.constant 643 : index
    %c0_28 = arith.constant 0 : index
    %47 = vector.load %arg5[%c643, %c0_28] : memref<656x128xbf16, #tpu.memory_space<vmem>>, vector<1x128xbf16>
    %48 = arith.extf %47 : vector<1x128xbf16> to vector<1x128xf32>
    %49 = vector.broadcast %48 : vector<1x128xf32> to vector<16x128xf32>
    %50 = arith.addf %46, %49 : vector<16x128xf32>
    %c0_29 = arith.constant 0 : index
    %c0_30 = arith.constant 0 : index
    %51 = vector.load %arg6[%c0_29, %c0_30] : memref<16x128xf32, #tpu.memory_space<vmem>>, vector<16x128xf32>
    tpu.vector_store %arg6[%c0_29, %c0_30], %50 {strides = array<i32>} : memref<16x128xf32, #tpu.memory_space<vmem>>, vector<16x128xf32>,
    return
  }
  func.func @transform_0(%arg0: i32) -> (i32, i32) {
    %c0_i32 = arith.constant 0 : i32
    %c0_i32_0 = arith.constant 0 : i32
    return %arg0, %c0_i32 : i32, i32
  }
  func.func @transform_1(%arg0: i32) -> (i32, i32) {
    %c0_i32 = arith.constant 0 : i32
    %c0_i32_0 = arith.constant 0 : i32
    return %arg0, %c0_i32 : i32, i32
  }
  func.func @transform_2(%arg0: i32) -> (i32, i32) {
    %c0_i32 = arith.constant 0 : i32
    %c0_i32_0 = arith.constant 0 : i32
    return %arg0, %c0_i32 : i32, i32
  }
  func.func @transform_3(%arg0: i32) -> (i32, i32) {
    %c0_i32 = arith.constant 0 : i32
    %c0_i32_0 = arith.constant 0 : i32
    %c0_i32_1 = arith.constant 0 : i32
    return %c0_i32, %c0_i32_0 : i32, i32
  }
  func.func @transform_4(%arg0: i32) -> (i32, i32) {
    %c0_i32 = arith.constant 0 : i32
    %c0_i32_0 = arith.constant 0 : i32
    %c0_i32_1 = arith.constant 0 : i32
    return %c0_i32, %c0_i32_0 : i32, i32
  }
  func.func @transform_5(%arg0: i32) -> (i32, i32) {
    %c0_i32 = arith.constant 0 : i32
    %c0_i32_0 = arith.constant 0 : i32
    return %arg0, %c0_i32 : i32, i32
  }
}

</mosaic_0001>

<bundles_post_ra>
// kernel: forward.1
= control target key start
LH: loop header
LB: loop body
LE: loop exit
PB: predicated region body
PF: predicated region fallthrough
CT: control target
= control target key end

     0   :  { %10 = vsyncpa [#allocation3], 0  ;;  %s1221_s0 = inlined_call_operand.vmem [shape: bf16[16,32], index: 0, kind: input, shape index: {}]   ;;  %s1222_s1 = inlined_call_operand.vmem [shape: bf16[16,8], index: 1, kind: input, shape index: {}]   ;;  %s1223_s2 = inlined_call_operand.vmem [shape: bf16[16,32], index: 2, kind: input, shape index: {}]   ;;  %s1224_s3 = inlined_call_operand.hbm [shape: bf16[80,256], index: 3, kind: input, shape index: {}]   ;;  %s1225_s4 = inlined_call_operand.hbm [shape: bf16[656,128], index: 4, kind: input, shape index: {}]   ;;  %s1226_s5 = inlined_call_operand.vmem [shape: f32[16,128], index: 5, kind: output, shape index: {}]  }
   0x1   :  { %11 = vsyncpa [#allocation5], 0  ;;  %s1105_s18 = smov [#allocation2]   ;;  %s1057_s22 = scalar_lea.hbm %s1224_s3, 1280 }
   0x2   :  { %s23_s19 = sshll.u32 %s1105_s18, 4  ;;  %p1058_p0 = scmp.ne.s32.totalorder %s1224_s3, %s1057_s22  ;;  %s24_s19 = int_to_ptr.vmem [resolvable:$true] %s23_s19 }
   0x3   :  { %p1061_p1 = scmp.lt.u32.totalorder %s1057_s22, %s1224_s3 }
   0x5   :  { %p1063_p2 = pnand %p1061_p1, %p1058_p0 }
   0x7   :  { %1066 = shalt.err (!%p1063_p2)
}
   0x8   :  { %s1067_s27 = scalar_lea.vmem %s24_s19, 1280  ;;  %p1072_p4 = scmp.lt.s32.totalorder %s24_s19, %s24_s19 }
   0x9   :  { %p1068_p3 = scmp.ne.s32.totalorder %s24_s19, %s1067_s27  ;;  %p1073_p5 = scmp.lt.s32.totalorder %s1067_s27, %s1067_s27 }
   0xb   :  { %p1074_p6 = por %p1073_p5, %p1072_p4 }
   0xd   :  { %p1075_p7 = pnand %p1074_p6, %p1068_p3 }
   0xf   :  { %1078 = shalt.err (!%p1075_p7)
}
  0x10   :  { %s1106_s28 = smov 128   ;;  %s1107_s29 = smov 8  }
  0x11   :  { %29 = dma.hbm_to_vmem [thread:$0]  %s1224_s3, 1280, %s24_s19, [#allocation3], %s1106_s28, %s1106_s28, %s1107_s29  }
  0x12   :  { %s1108_s7 = smov [#allocation4]   ;;  %s1079_s11 = scalar_lea.hbm %s1225_s4, 5248 }
  0x13   :  { %s35_s8 = sshll.u32 %s1108_s7, 4  ;;  %p1080_p8 = scmp.ne.s32.totalorder %s1225_s4, %s1079_s11  ;;  %s36_s8 = int_to_ptr.vmem [resolvable:$true] %s35_s8 }
  0x14   :  { %p1083_p9 = scmp.lt.u32.totalorder %s1079_s11, %s1225_s4 }
  0x16   :  { %p1085_p10 = pnand %p1083_p9, %p1080_p8 }
  0x18   :  { %1088 = shalt.err (!%p1085_p10)
}
  0x19   :  { %s1089_s16 = scalar_lea.vmem %s36_s8, 5248  ;;  %p1094_p12 = scmp.lt.s32.totalorder %s36_s8, %s36_s8 }
  0x1a   :  { %p1090_p11 = scmp.ne.s32.totalorder %s36_s8, %s1089_s16  ;;  %p1095_p13 = scmp.lt.s32.totalorder %s1089_s16, %s1089_s16 }
  0x1c   :  { %p1096_p0 = por %p1095_p13, %p1094_p12 }
  0x1e   :  { %p1097_p1 = pnand %p1096_p0, %p1090_p11 }
  0x20   :  { %1100 = shalt.err (!%p1097_p1)
}
  0x21   :  { %s1109_s3 = smov 64   ;;  %s1110_s17 = smov 4  }
  0x22   :  { %41 = dma.hbm_to_vmem [thread:$0]  %s1225_s4, 5248, %s36_s8, [#allocation5], %s1109_s3, %s1109_s3, %s1110_s17  }
  0x23   :  { %1101 = dma.done.wait [#allocation3], 1280  }
  0x24   :  { %1102 = vsyncadd [#allocation3], 4294966016 }
  0x25   :  { %1103 = dma.done.wait [#allocation5], 5248  }
  0x26   :  { %1104 = vsyncadd [#allocation5], 4294962048  ;;  %v1111_v0 = vmov 0   ;;  %v1000_v1 = vld [vmem:[#allocation2 + $0x4] ss:$8 sps:$4 sm:$0xff]   ;;  %vm221_vm0 = vcmask 1043456   ;;  %v278_v38 = vlaneseq }
  0x27   :  { %193 = vmatprep.mubr.bf16.mxu0 %v1111_v0  ;;  %122 = vmatprep.mubr.bf16.mxu1 %v1111_v0  ;;  %v1002_v2 = vld [vmem:[#allocation2] ss:$8 sps:$4 sm:$0xff]   ;;  %v1003_v3 = vld [vmem:[#allocation2 + $0x14] ss:$8 sps:$4 sm:$0xff]   ;;  %v1005_v4 = vld [vmem:[#allocation2 + $0x10] ss:$8 sps:$4 sm:$0xff]  }
  0x28   :  { %161 = vmatprep.subr.bf16.mxu0 %v1000_v1  ;;  %v206_v5 = vld [vmem:[#allocation2 + $0x40] sm:$0xff]  ;;  %vm86_vm1 = vcmask 261120   ;;  %v1012_v11 = vld [vmem:[#allocation2 + $0x34] ss:$8 sps:$4 sm:$0xff]   ;;  %v1014_v12 = vld [vmem:[#allocation2 + $0x30] ss:$8 sps:$4 sm:$0xff]  }
  0x29   :  { %162 = vmatpush1.bf16.msra.mxu0 %v1002_v2  ;;  %v831_v6 = vcombine.high %v206_v5, %v206_v5  ;;  %v830_v7 = vcombine.low %v206_v5, %v206_v5  ;;  %v1009_v8 = vld [vmem:[#allocation2 + $0x24] ss:$8 sps:$4 sm:$0xff]   ;;  %v1011_v9 = vld [vmem:[#allocation2 + $0x20] ss:$8 sps:$4 sm:$0xff]   ;;  %v1017_v14 = vld [vmem:[#allocation4 + $0x40] sm:$0xff]   ;;  %vm217_vm2 = vcmask 64512  }
  0x2a   :  { %163 = vmatprep.subr.bf16.mxu0 %v1003_v3  ;;  %v1006_v10 = vld [vmem:[%s1221_s0] sm:$0xff]   ;;  %90 = vmatprep.subr.bf16.mxu1 %v1009_v8  ;;  %v1018_v16 = vld [vmem:[#allocation4] sm:$0xff]   ;;  %v1019_v17 = vld [vmem:[#allocation4 + $0x48] sm:$0xff]   ;;  %v1112_v33 = vmov 0.0   ;;  %v1186_v39 = vshrl.u32 %v278_v38, 7  ;;  %vm1113_vm3 = vmmov 0  }
  0x2b   :  { %91 = vmatpush1.bf16.msra.mxu1 %v1011_v9  ;;  %v223_v13 = vsel %vm221_vm0, %v830_v7, 0  ;;  %v1015_v15 = vld [vmem:[%s1223_s2] sm:$0xff]   ;;  %v1020_v18 = vld [vmem:[#allocation4 + $0x8] sm:$0xff]   ;;  %v1023_v22 = vld [vmem:[#allocation4 + $0x58] sm:$0xff]  }
  0x2c   :  { %92 = vmatprep.subr.bf16.mxu1 %v1012_v11  ;;  %v1016_v19 = vld [vmem:[%s1222_s1] sm:$0xff]   ;;  %v1024_v23 = vld [vmem:[#allocation4 + $0x18] sm:$0xff]   ;;  %v1025_v24 = vld [vmem:[#allocation4 + $0x60] sm:$0xff]   ;;  %v280_v45 = vsub.s32 0, %v1186_v39 }
  0x2d   :  { %164 = vmatpush1.bf16.msra.mxu0 %v1005_v4  ;;  %v1021_v20 = vld [vmem:[#allocation4 + $0x50] sm:$0xff]   ;;  %v1026_v25 = vld [vmem:[#allocation4 + $0x20] sm:$0xff]   ;;  %v1027_v26 = vld [vmem:[#allocation4 + $0x68] sm:$0xff]  }
  0x2e   :  { %832 = vmatprep.subr.msk.bf16.mxu0 %vm221_vm0, %v831_v6  ;;  %v1022_v21 = vld [vmem:[#allocation4 + $0x10] sm:$0xff]   ;;  %v1028_v27 = vld [vmem:[#allocation4 + $0x28] sm:$0xff]   ;;  %v1031_v30 = vld [vmem:[#allocation4 + $0x78] sm:$0xff]  }
  0x2f   :  { %93 = vmatpush1.bf16.msra.mxu1 %v1014_v12  ;;  %v1029_v28 = vld [vmem:[#allocation4 + $0x70] sm:$0xff]   ;;  %v1032_v31 = vld [vmem:[#allocation4 + $0x38] sm:$0xff]   ;;  %v1033_v32 = vld [vmem:[#allocation4 + $0x80] sm:$0xff]  }
  0x30   :  { %828 = vmatmul.mubr.msk.bf16.vlgmr.msra.gmra.mrb[0].mxu0 %vm86_vm1, %v1006_v10  ;;  %874 = vmatprep.subr.bf16.mxu1 %v1017_v14  ;;  %v1030_v29 = vld [vmem:[#allocation4 + $0x30] sm:$0xff]   ;;  %v1034_v34 = vld [vmem:[#allocation4 + $0x88] sm:$0xff]   ;;  %v1036_v36 = vld [vmem:[#allocation4 + $0x98] sm:$0xff]  }
  0x31   :  { %229 = vmatpush1.bf16.msra.mxu0 %v223_v13  ;;  %260 = vmatprep.mubr.bf16.mxu0 %v1111_v0  ;;  %v1035_v35 = vld [vmem:[#allocation4 + $0x90] sm:$0xff]   ;;  %v1037_v37 = vld [vmem:[#allocation4 + $0xa0] sm:$0xff]   ;;  %v275_v41 = vld [vmem:[#allocation2 + $0x48] sm:$0x11] }
  0x32   :  { %822 = vmatmul.mubr.msk.bf16.vlgmr.msra.gmra.mrb[0].mxu1 %vm86_vm1, %v1015_v15  ;;  %923 = vmatprep.subr.bf16.mxu0 %v1112_v33  ;;  %v276_v44 = vunpack.c.l.bf16 %v275_v41  ;;  %v277_v47 = vunpack.c.h.bf16 %v275_v41  ;;  %v1038_v4 = vld [vmem:[#allocation4 + $0xa8] sm:$0xff]   ;;  %v1039_v5 = vld [vmem:[#allocation4 + $0xb0] sm:$0xff]   ;;  %v1040_v6 = vld [vmem:[#allocation4 + $0xb8] sm:$0xff]  }
  0x33   :  { %875 = vmatpush3.bf16.msra.mxu1 %v1018_v16  ;;  %v1041_v7 = vld [vmem:[#allocation4 + $0xc0] sm:$0xff]   ;;  %v1042_v8 = vld [vmem:[#allocation4 + $0xc8] sm:$0xff]   ;;  %v1043_v9 = vld [vmem:[#allocation4 + $0xd0] sm:$0xff]  }
  0x34   :  { %876 = vmatprep.subr.bf16.mxu1 %v1019_v17  ;;  %v281_v48 = vrot.slane %v276_v44, %v280_v45  ;;  %v285_v50 = vrot.slane %v277_v47, %v280_v45  ;;  %v1044_v10 = vld [vmem:[#allocation4 + $0xd8] sm:$0xff]   ;;  %v1045_v11 = vld [vmem:[#allocation4 + $0xe0] sm:$0xff]   ;;  %v1046_v12 = vld [vmem:[#allocation4 + $0xe8] sm:$0xff]  }
  0x35   :  { %v328_v13 = vld [vmem:[#allocation4 + $0x140] sm:$0x1] }
  0x36   :  { %v329_v14 = vunpack.c.l.bf16 %v328_v13 }
  0x37   :  { %877 = vmatpush3.bf16.msra.mxu1 %v1020_v18 }
  0x38   :  { %878 = vmatprep.subr.bf16.mxu1 %v1021_v20  ;;  %v333_v16 = vrot.slane %v329_v14, %v280_v45 }
  0x3b   :  { %879 = vmatpush3.bf16.msra.mxu1 %v1022_v21 }
  0x3c   :  { %833 = vmatmul.mubr.msk.bf16.vlgmr.msra.gmra.mrb[0].mxu0 %vm217_vm2, %v1016_v19  ;;  %880 = vmatprep.subr.bf16.mxu1 %v1023_v22 }
  0x3d   :  { %924 = vmatpush3.bf16.msra.mxu0 %v1033_v32  ;;  %939 = vmatprep.mubr.msk.bf16.mxu0 %vm1113_vm3, %v1112_v33  ;;  %v1052_v32 = vld [vmem:[#allocation4 + $0x118] sm:$0xff]  }
  0x3e   :  { %925 = vmatprep.subr.bf16.mxu0 %v1112_v33 }
  0x3f   :  { %881 = vmatpush3.bf16.msra.mxu1 %v1024_v23 }
  0x40   :  { %882 = vmatprep.subr.bf16.mxu1 %v1025_v24 }
  0x41   :  { %926 = vmatpush3.bf16.msra.mxu0 %v1034_v34  ;;  %v1053_v34 = vld [vmem:[#allocation4 + $0x120] sm:$0xff]  }
  0x42   :  { %927 = vmatprep.subr.bf16.mxu0 %v1112_v33 }
  0x43   :  { %883 = vmatpush3.bf16.msra.mxu1 %v1026_v25 }
  0x44   :  { %884 = vmatprep.subr.bf16.mxu1 %v1027_v26 }
  0x45   :  { %928 = vmatpush3.bf16.msra.mxu0 %v1035_v35  ;;  %v1054_v35 = vld [vmem:[#allocation4 + $0x128] sm:$0xff]  }
  0x46   :  { %929 = vmatprep.subr.bf16.mxu0 %v1112_v33 }
  0x47   :  { %885 = vmatpush3.bf16.msra.mxu1 %v1028_v27  ;;  %v1047_v27 = vld [vmem:[#allocation4 + $0xf0] sm:$0xff]  }
  0x48   :  { %886 = vmatprep.subr.bf16.mxu1 %v1029_v28  ;;  %v1048_v28 = vld [vmem:[#allocation4 + $0xf8] sm:$0xff]  }
  0x49   :  { %930 = vmatpush3.bf16.msra.mxu0 %v1036_v36  ;;  %v492_v36 = vsub.s32 1, %v1186_v39 }
  0x4a   :  { %931 = vmatprep.subr.bf16.mxu0 %v1112_v33 }
  0x4b   :  { %887 = vmatpush3.bf16.msra.mxu1 %v1030_v29  ;;  %v1049_v29 = vld [vmem:[#allocation4 + $0x100] sm:$0xff]  }
  0x4c   :  { %888 = vmatprep.subr.bf16.mxu1 %v1031_v30  ;;  %v1050_v30 = vld [vmem:[#allocation4 + $0x108] sm:$0xff]  }
  0x4d   :  { %932 = vmatpush3.bf16.msra.mxu0 %v1037_v37  ;;  %v493_v37 = vrot.slane %v329_v14, %v492_v36 }
  0x4e   :  { %933 = vmatprep.subr.bf16.mxu0 %v1112_v33 }
  0x4f   :  { %889 = vmatpush3.bf16.msra.mxu1 %v1032_v31  ;;  %v1051_v31 = vld [vmem:[#allocation4 + $0x110] sm:$0xff]  }
  0x50   :  { %943 = vmatprep.subr.bf16.mxu1 %v1112_v33 }
  0x51   :  { %934 = vmatpush3.bf16.msra.mxu0 %v1038_v4 }
  0x52   :  { %935 = vmatprep.subr.bf16.mxu0 %v1112_v33 }
  0x55   :  { %936 = vmatpush3.bf16.msra.mxu0 %v1039_v5 }
  0x56   :  { %937 = vmatprep.subr.bf16.mxu0 %v1112_v33 }
  0x59   :  { %938 = vmatpush3.bf16.msra.mxu0 %v1040_v6 }
  0x5a   :  { %963 = vmatprep.subr.bf16.mxu0 %v1112_v33 }
 0x105   :  { %v124_v40 = vpop.f32.mrb[0].mxu1 }
 0x106   :  { %v126_v42 = vpop.f32.mrb[1].mxu1 }
 0x107   :  { %v128_v43 = vpop.f32.mrb[2].mxu1 }
 0x108   :  { %v130_v46 = vpop.f32.mrb[3].mxu1 }
 0x10f   :  { %v262_v49 = vpop.f32.mrb[0].mxu0 }
 0x110   :  { %v983_v51 = vadd.f32 %v262_v49, %v124_v40  ;;  %v264_v52 = vpop.f32.mrb[1].mxu0  ;;  %v1056_v49 = vld [vmem:[#allocation4 + $0x138] sm:$0xff]  }
 0x111   :  { %v984_v53 = vadd.f32 %v264_v52, %v126_v42  ;;  %v266_v54 = vpop.f32.mrb[2].mxu0  ;;  %v606_v52 = vsub.s32 2, %v1186_v39 }
 0x112   :  { %v286_v55 = vadd.f32 %v983_v51, %v281_v48  ;;  %v985_v56 = vadd.f32 %v266_v54, %v128_v43  ;;  %v268_v57 = vpop.f32.mrb[3].mxu0 }
 0x113   :  { %v287_v58 = vadd.f32 %v984_v53, %v285_v50  ;;  %v986_v59 = vadd.f32 %v268_v57, %v130_v46 }
 0x114   :  { %v288_v60 = vadd.f32 %v985_v56, %v281_v48  ;;  %v290_v62 = vmax.f32 %v286_v55, 0.0  ;;  %v1055_v48 = vld [vmem:[#allocation4 + $0x130] sm:$0xff]  }
 0x115   :  { %v289_v61 = vadd.f32 %v986_v59, %v285_v50  ;;  %v291_v0 = vmax.f32 %v287_v58, 0.0  ;;  %v602_v50 = vld [vmem:[#allocation4 + $0x140] sm:$0x2] }
 0x116   :  { %v292_v63 = vmax.f32 %v288_v60, 0.0  ;;  %v603_v51 = vunpack.c.l.bf16 %v602_v50 }
 0x117   :  { %v293_v1 = vmax.f32 %v289_v61, 0.0 }
 0x118   :  { %v294_v2 = vpack.c.bf16 %v292_v63, %v290_v62  ;;  %v607_v53 = vrot.slane %v603_v51, %v606_v52  ;;  %v718_v63 = vsub.s32 3, %v1186_v39 }
 0x119   :  { %v295_v3 = vpack.c.bf16 %v293_v1, %v291_v0 }
 0x11b   :  { %462 = vmatprep.mubr.bf16.mxu1 %v295_v3 }
 0x11c   :  { %463 = vmatmul.mubr.bf16.vlgmr.msra.gmra.mrb[4].mxu1 %v294_v2 }
 0x11d   :  { %959 = vmatprep.mubr.msk.bf16.mxu1 %vm1113_vm3, %v1112_v33  ;;  %944 = vmatpush3.bf16.msra.mxu1 %v1041_v7 }
 0x11e   :  { %945 = vmatprep.subr.bf16.mxu1 %v1112_v33 }
 0x121   :  { %946 = vmatpush3.bf16.msra.mxu1 %v1042_v8 }
 0x122   :  { %947 = vmatprep.subr.bf16.mxu1 %v1112_v33 }
 0x125   :  { %948 = vmatpush3.bf16.msra.mxu1 %v1043_v9 }
 0x126   :  { %949 = vmatprep.subr.bf16.mxu1 %v1112_v33 }
 0x129   :  { %950 = vmatpush3.bf16.msra.mxu1 %v1044_v10 }
 0x12a   :  { %951 = vmatprep.subr.bf16.mxu1 %v1112_v33 }
 0x12d   :  { %952 = vmatpush3.bf16.msra.mxu1 %v1045_v11 }
 0x12e   :  { %953 = vmatprep.subr.bf16.mxu1 %v1112_v33 }
 0x131   :  { %954 = vmatpush3.bf16.msra.mxu1 %v1046_v12 }
 0x132   :  { %955 = vmatprep.subr.bf16.mxu1 %v1112_v33 }
 0x135   :  { %956 = vmatpush3.bf16.msra.mxu1 %v1047_v27 }
 0x136   :  { %957 = vmatprep.subr.bf16.mxu1 %v1112_v33 }
 0x139   :  { %958 = vmatpush3.bf16.msra.mxu1 %v1048_v28 }
 0x1ef   :  { %v890_v15 = vpop.f32.mrb[4].mxu1 }
 0x1f0   :  { %v891_v17 = vpop.f32.mrb[5].mxu1 }
 0x1f1   :  { %v892_v18 = vadd.f32 %v891_v17, %v890_v15  ;;  %v893_v19 = vpop.f32.mrb[6].mxu1 }
 0x1f2   :  { %v894_v20 = vpop.f32.mrb[7].mxu1 }
 0x1f3   :  { %v465_v21 = vadd.f32 %v892_v18, %v333_v16  ;;  %v895_v22 = vadd.f32 %v894_v20, %v893_v19 }
 0x1f5   :  { %v468_v23 = vadd.f32 %v895_v22, %v333_v16  ;;  %v471_v24 = vmax.f32 %v465_v21, 0.0 }
 0x1f7   :  { %v472_v25 = vmax.f32 %v468_v23, 0.0 }
 0x1f9   :  { %v473_v26 = vpack.c.bf16 %v472_v25, %v471_v24 }
 0x1fb   :  { %940 = vmatmul.mubr.bf16.vlgmr.msra.gmra.mrb[4].mxu0 %v473_v26 }
 0x1fc   :  { %979 = vmatprep.mubr.msk.bf16.mxu0 %vm1113_vm3, %v1112_v33  ;;  %964 = vmatpush3.bf16.msra.mxu0 %v1049_v29 }
 0x1fd   :  { %965 = vmatprep.subr.bf16.mxu0 %v1112_v33 }
 0x200   :  { %966 = vmatpush3.bf16.msra.mxu0 %v1050_v30 }
 0x201   :  { %967 = vmatprep.subr.bf16.mxu0 %v1112_v33 }
 0x204   :  { %968 = vmatpush3.bf16.msra.mxu0 %v1051_v31 }
 0x205   :  { %969 = vmatprep.subr.bf16.mxu0 %v1112_v33 }
 0x208   :  { %970 = vmatpush3.bf16.msra.mxu0 %v1052_v32 }
 0x209   :  { %971 = vmatprep.subr.bf16.mxu0 %v1112_v33 }
 0x20c   :  { %972 = vmatpush3.bf16.msra.mxu0 %v1053_v34 }
 0x20d   :  { %973 = vmatprep.subr.bf16.mxu0 %v1112_v33 }
 0x210   :  { %974 = vmatpush3.bf16.msra.mxu0 %v1054_v35 }
 0x211   :  { %975 = vmatprep.subr.bf16.mxu0 %v1112_v33 }
 0x214   :  { %976 = vmatpush3.bf16.msra.mxu0 %v1055_v48 }
 0x215   :  { %977 = vmatprep.subr.bf16.mxu0 %v1112_v33  ;;  %v719_v33 = vrot.slane %v603_v51, %v718_v63 }
 0x218   :  { %978 = vmatpush3.bf16.msra.mxu0 %v1056_v49 }
 0x2ce   :  { %v576_v38 = vpop.f32.mrb[4].mxu0 }
 0x2cf   :  { %v577_v40 = vadd.f32 %v576_v38, %v493_v37  ;;  %v941_v41 = vpop.f32.mrb[5].mxu0 }
 0x2d0   :  { %v579_v42 = vpop.f32.mrb[6].mxu0 }
 0x2d1   :  { %v580_v43 = vadd.f32 %v579_v42, %v493_v37  ;;  %v942_v44 = vpop.f32.mrb[7].mxu0  ;;  %v583_v45 = vmax.f32 %v577_v40, 0.0 }
 0x2d3   :  { %v584_v46 = vmax.f32 %v580_v43, 0.0 }
 0x2d5   :  { %v585_v47 = vpack.c.bf16 %v584_v46, %v583_v45 }
 0x2d7   :  { %960 = vmatmul.mubr.bf16.vlgmr.msra.gmra.mrb[8].mxu1 %v585_v47 }
 0x3aa   :  { %v690_v54 = vpop.f32.mrb[8].mxu1 }
 0x3ab   :  { %v691_v55 = vadd.f32 %v690_v54, %v607_v53  ;;  %v961_v56 = vpop.f32.mrb[9].mxu1 }
 0x3ac   :  { %v693_v57 = vpop.f32.mrb[10].mxu1 }
 0x3ad   :  { %v694_v58 = vadd.f32 %v693_v57, %v607_v53  ;;  %v962_v59 = vpop.f32.mrb[11].mxu1  ;;  %v697_v60 = vmax.f32 %v691_v55, 0.0 }
 0x3af   :  { %v698_v61 = vmax.f32 %v694_v58, 0.0 }
 0x3b1   :  { %v699_v62 = vpack.c.bf16 %v698_v61, %v697_v60 }
 0x3b3   :  { %980 = vmatmul.mubr.bf16.vlgmr.msra.gmra.mrb[8].mxu0 %v699_v62 }
 0x486   :  { %v802_v0 = vpop.f32.mrb[8].mxu0 }
 0x487   :  { %v803_v1 = vadd.f32 %v802_v0, %v719_v33  ;;  %v981_v2 = vpop.f32.mrb[9].mxu0 }
 0x488   :  { %v805_v3 = vpop.f32.mrb[10].mxu0 }
 0x489   :  { %809 = vst [vmem:[%s1226_s5] sm:$0xff] %v803_v1  ;;  %v806_v4 = vadd.f32 %v805_v3, %v719_v33  ;;  %v982_v5 = vpop.f32.mrb[11].mxu0 }
 0x48b   :  { %810 = vst [vmem:[%s1226_s5 + $0x8] sm:$0xff] %v806_v4 }
 0x48c   :  { %815 = vsyncpa [#allocation3], 1 }
 0x48d   :  { %816 = vsyncpa [#allocation5], 1 }

</bundles_post_ra>
